<compile_context>
chip_gen: v7x
topology: tpu7x:2x2x1
jax: 0.10.0
libtpu: 0.0.40
codegen_flags: <defaults>
</compile_context>

<pallas_src>
import functools

import jax
import jax.numpy as jnp
from jax.experimental import pallas as pl
from jax.experimental.pallas import tpu as pltpu


# ----------------------------------------------------------------------------
# Kernel: one batch tile, fused twin-Q MLP (3 matmuls, f32 accumulation).
# ----------------------------------------------------------------------------
def _qnet_fused_kernel(s_ref, a_ref,
                       w1_ref, w2_ref, w3_ref,
                       b1_ref, b2_ref, b3_ref,
                       out_ref):
    # In-kernel (VMEM) concat of the state/action tiles: (tb, d_in).
    sa = jnp.concatenate([s_ref[...], a_ref[...]], axis=-1)

    # Layer 1: (tb, d_in) @ (d_in, 2H)  — single MXU pass, f32 accumulate.
    x = jnp.dot(sa, w1_ref[...], preferred_element_type=jnp.float32)
    x = jnp.maximum(x + b1_ref[...], 0.0)

    # Layer 2: block-diagonal (2H, 2H) keeps the two Q branches independent.
    x = jnp.dot(x.astype(w2_ref.dtype), w2_ref[...],
                preferred_element_type=jnp.float32) + b2_ref[...]
    x = jnp.maximum(x, 0.0)

    # Layer 3: (tb, 2H) @ (2H, 2) -> (tb, 2); column 0 = q1, column 1 = q2.
    out_ref[...] = (jnp.dot(x.astype(w3_ref.dtype), w3_ref[...],
                            preferred_element_type=jnp.float32)
                    + b3_ref[...]).astype(out_ref.dtype)


# ----------------------------------------------------------------------------
# Parameter packing (done once, outside the hot path).
#   Weights are cast to `compute_dtype` here so the jit'd forward emits no
#   per-call casts on constants.  Biases stay f32 (added on the f32 acc).
# ----------------------------------------------------------------------------
def pack_qnet_params(params, compute_dtype=jnp.float32):
    """Fuse twin-Q params into block-diagonal / concatenated form."""
    H = params["w1"].shape[1]
    w1 = jnp.concatenate([params["w1"], params["w4"]], axis=1)        # (d_in, 2H)
    zhh = jnp.zeros((H, H), jnp.float32)
    w2 = jnp.block([[params["w2"], zhh], [zhh, params["w5"]]])        # (2H, 2H)
    zh1 = jnp.zeros((H, 1), jnp.float32)
    w3 = jnp.block([[params["w3"], zh1], [zh1, params["w6"]]])        # (2H, 2)
    b1 = jnp.concatenate([params["b1"], params["b4"]], axis=1)        # (1, 2H)
    b2 = jnp.concatenate([params["b2"], params["b5"]], axis=1)        # (1, 2H)
    b3 = jnp.concatenate([params["b3"], params["b6"]], axis=1)        # (1, 2)
    return {"w1": w1.astype(compute_dtype),
            "w2": w2.astype(compute_dtype),
            "w3": w3.astype(compute_dtype),
            "b1": b1, "b2": b2, "b3": b3}


def _round_up(x, m):
    return ((x + m - 1) // m) * m


# ----------------------------------------------------------------------------
# Wrapper
# ----------------------------------------------------------------------------
def qnet_forward(state, action, packed, *, block_b=8192, min_grid_steps=2):
    """Pallas QNet.forward. Returns fused (B, 2): col 0 = q1, col 1 = q2."""
    B, d_state = state.shape
    d_action = action.shape[1]
    d_in = d_state + d_action
    H2 = packed["w1"].shape[1]  # = 2 * hidden_size

    compute_dtype = packed["w1"].dtype
    s = state.astype(compute_dtype)
    a = action.astype(compute_dtype)
    w1, w2, w3 = packed["w1"], packed["w2"], packed["w3"]
    b1, b2, b3 = packed["b1"], packed["b2"], packed["b3"]  # f32

    # Batch tile: 8-aligned, capped by block_b, and small enough to give at
    # least `min_grid_steps` grid steps (lets v7x shard across both TCs).
    tb_cap = min(_round_up(block_b, 8),
                 _round_up(pl.cdiv(B, max(min_grid_steps, 1)), 8))
    tb = max(8, min(_round_up(B, 8), tb_cap))
    grid = (pl.cdiv(B, tb),)

    def resident(arr):  # same block every step -> DMAed once, stays in VMEM
        return pl.BlockSpec(arr.shape, lambda i: (0, 0))

    in_specs = [
        pl.BlockSpec((tb, d_state), lambda i: (i, 0)),
        pl.BlockSpec((tb, d_action), lambda i: (i, 0)),
        resident(w1), resident(w2), resident(w3),
        resident(b1), resident(b2), resident(b3),
    ]
    out_spec = pl.BlockSpec((tb, 2), lambda i: (i, 0))

    itemsize = jnp.dtype(compute_dtype).itemsize
    flops = 2 * B * (d_in * H2 + H2 * H2 + H2 * 2)
    bytes_accessed = (B * d_in * itemsize                      # activations in
                      + B * 2 * 4                              # fused q out
                      + sum(int(p.size) * itemsize for p in (w1, w2, w3))
                      + sum(int(p.size) * 4 for p in (b1, b2, b3)))

    out = pl.pallas_call(
        _qnet_fused_kernel,
        out_shape=jax.ShapeDtypeStruct((B, 2), jnp.float32),
        grid=grid,
        in_specs=in_specs,
        out_specs=out_spec,
        compiler_params=pltpu.CompilerParams(
            dimension_semantics=("parallel",),
            vmem_limit_bytes=32 * 1024 * 1024),
        cost_estimate=pl.CostEstimate(flops=flops, transcendentals=0,
                                      bytes_accessed=bytes_accessed),
    )(s, a, w1, w2, w3, b1, b2, b3)

    return out


# ----------------------------------------------------------------------------
# Init (matches torch: xavier_uniform_(weight, gain=1), constant_(bias, 0))
# ----------------------------------------------------------------------------
def _xavier_uniform(key, fan_in, fan_out, gain=1.0):
    limit = gain * jnp.sqrt(6.0 / (fan_in + fan_out))
    # Stored as (in, out) so the kernel does x @ W.
    return jax.random.uniform(key, (fan_in, fan_out), jnp.float32, -limit, limit)


def init_qnet_params(key, d_state, d_action, hidden_size):
    d_in = d_state + d_action
    ks = jax.random.split(key, 6)
    dims = [(d_in, hidden_size), (hidden_size, hidden_size), (hidden_size, 1),
            (d_in, hidden_size), (hidden_size, hidden_size), (hidden_size, 1)]
    params = {}
    for i, (k, (fi, fo)) in enumerate(zip(ks, dims), start=1):
        params[f"w{i}"] = _xavier_uniform(k, fi, fo)
        params[f"b{i}"] = jnp.zeros((1, fo), jnp.float32)
    return params


def _reference_forward(state, action, params):
    sa = jnp.concatenate([state, action], axis=-1)
    x1 = jax.nn.relu(sa @ params["w1"] + params["b1"])
    x1 = jax.nn.relu(x1 @ params["w2"] + params["b2"])
    x1 = x1 @ params["w3"] + params["b3"]
    x2 = jax.nn.relu(sa @ params["w4"] + params["b4"])
    x2 = jax.nn.relu(x2 @ params["w5"] + params["b5"])
    x2 = x2 @ params["w6"] + params["b6"]
    return x1, x2


if __name__ == "__main__":
    d_state, d_action, hidden_size, batch = 16, 8, 32, 8

    key = jax.random.PRNGKey(0)
    k_params, k_state, k_action = jax.random.split(key, 3)

    params = init_qnet_params(k_params, d_state, d_action, hidden_size)
    packed_f32 = pack_qnet_params(params, jnp.float32)
    packed_bf16 = pack_qnet_params(params, jnp.bfloat16)

    state = jax.random.normal(k_state, (batch, d_state), jnp.float32)
    action = jax.random.normal(k_action, (batch, d_action), jnp.float32)

    # --- exact f32 path, small batch ---------------------------------------
    fwd = jax.jit(functools.partial(qnet_forward, block_b=8192))
    q = fwd(state, action, packed_f32)
    jax.block_until_ready(q)
    q1, q2 = q[:, 0:1], q[:, 1:2]   # slice at the use site

    r1, r2 = _reference_forward(state, action, params)
    assert q.shape == (batch, 2)
    assert jnp.allclose(q1, r1, atol=1e-5)
    assert jnp.allclose(q2, r2, atol=1e-5)

    # --- exercise a multi-step grid (>=2 parallel steps, partial last tile) -
    B2 = 300
    k_s2, k_a2 = jax.random.split(jax.random.PRNGKey(1))
    state2 = jax.random.normal(k_s2, (B2, d_state), jnp.float32)
    action2 = jax.random.normal(k_a2, (B2, d_action), jnp.float32)

    fwd_grid = jax.jit(functools.partial(qnet_forward, block_b=128))
    g = fwd_grid(state2, action2, packed_f32)
    jax.block_until_ready(g)
    gr1, gr2 = _reference_forward(state2, action2, params)
    assert g.shape == (B2, 2)
    assert jnp.allclose(g[:, 0:1], gr1, atol=1e-5)
    assert jnp.allclose(g[:, 1:2], gr2, atol=1e-5)

    # --- bf16 MXU fast path (f32 accumulate), loose tolerance vs f32 ref ----
    fwd_bf16 = jax.jit(functools.partial(qnet_forward, block_b=128))
    h = fwd_bf16(state2, action2, packed_bf16)
    jax.block_until_ready(h)
    assert jnp.allclose(h[:, 0:1], gr1, atol=0.15, rtol=0.05)
    assert jnp.allclose(h[:, 1:2], gr2, atol=0.15, rtol=0.05)

    print("KERNEL_OK")
</pallas_src>

<mosaic_0001>
module attributes {stable_mosaic.version = 11 : i64} {
  func.func @_qnet_fused_kernel(%arg0: i32, %arg1: memref<8x16xf32, #tpu.memory_space<vmem>>, %arg2: memref<8x8xf32, #tpu.memory_space<vmem>>, %arg3: memref<24x64xf32, #tpu.memory_space<vmem>>, %arg4: memref<64x64xf32, #tpu.memory_space<vmem>>, %arg5: memref<64x2xf32, #tpu.memory_space<vmem>>, %arg6: memref<1x64xf32, #tpu.memory_space<vmem>>, %arg7: memref<1x64xf32, #tpu.memory_space<vmem>>, %arg8: memref<1x2xf32, #tpu.memory_space<vmem>>, %arg9: memref<8x2xf32, #tpu.memory_space<vmem>>) attributes {dimension_semantics = [#tpu.dimension_semantics<parallel>], iteration_bounds = array<i64: 1>, scalar_prefetch = 0 : i64, scratch_operands = 0 : i64, tpu.core_type = #tpu.core_type<tc>, window_params = [{transform_indices = @transform_0, window_bounds = array<i64: 8, 16>}, {transform_indices = @transform_1, window_bounds = array<i64: 8, 8>}, {pipeline_mode = #tpu.pipeline_mode<synchronous>, transform_indices = @transform_2, window_bounds = array<i64: 24, 64>}, {pipeline_mode = #tpu.pipeline_mode<synchronous>, transform_indices = @transform_3, window_bounds = array<i64: 64, 64>}, {pipeline_mode = #tpu.pipeline_mode<synchronous>, transform_indices = @transform_4, window_bounds = array<i64: 64, 2>}, {pipeline_mode = #tpu.pipeline_mode<synchronous>, transform_indices = @transform_5, window_bounds = array<i64: 1, 64>}, {pipeline_mode = #tpu.pipeline_mode<synchronous>, transform_indices = @transform_6, window_bounds = array<i64: 1, 64>}, {pipeline_mode = #tpu.pipeline_mode<synchronous>, transform_indices = @transform_7, window_bounds = array<i64: 1, 2>}, {transform_indices = @transform_8, window_bounds = array<i64: 8, 2>}]} {
    %c0 = arith.constant 0 : index
    %c0_0 = arith.constant 0 : index
    %0 = vector.load %arg1[%c0, %c0_0] : memref<8x16xf32, #tpu.memory_space<vmem>>, vector<8x16xf32>
    %c0_1 = arith.constant 0 : index
    %c0_2 = arith.constant 0 : index
    %1 = vector.load %arg2[%c0_1, %c0_2] : memref<8x8xf32, #tpu.memory_space<vmem>>, vector<8x8xf32>
    %2 = tpu.concatenate %0, %1 in 1 : vector<8x16xf32>, vector<8x8xf32> -> vector<8x24xf32>
    %c0_3 = arith.constant 0 : index
    %c0_4 = arith.constant 0 : index
    %3 = vector.load %arg3[%c0_3, %c0_4] : memref<24x64xf32, #tpu.memory_space<vmem>>, vector<24x64xf32>
    %cst = arith.constant dense<0.000000e+00> : vector<8x64xf32>
    %4 = tpu.matmul %2, %3, %cst {dimension_numbers = #tpu.dot_dimension_numbers<[1], [0], [0], [1], [0, 0, 1, 1], [], []>} : vector<8x24xf32>, vector<24x64xf32>, vector<8x64xf32> -> vector<8x64xf32>
    %c0_5 = arith.constant 0 : index
    %c0_6 = arith.constant 0 : index
    %5 = vector.load %arg6[%c0_5, %c0_6] : memref<1x64xf32, #tpu.memory_space<vmem>>, vector<1x64xf32>
    %6 = vector.broadcast %5 : vector<1x64xf32> to vector<8x64xf32>
    %7 = arith.addf %4, %6 : vector<8x64xf32>
    %cst_7 = arith.constant 0.000000e+00 : f32
    %8 = vector.broadcast %cst_7 : f32 to vector<8x64xf32>
    %9 = arith.maximumf %7, %8 : vector<8x64xf32>
    %c0_8 = arith.constant 0 : index
    %c0_9 = arith.constant 0 : index
    %10 = vector.load %arg4[%c0_8, %c0_9] : memref<64x64xf32, #tpu.memory_space<vmem>>, vector<64x64xf32>
    %cst_10 = arith.constant dense<0.000000e+00> : vector<8x64xf32>
    %11 = tpu.matmul %9, %10, %cst_10 {dimension_numbers = #tpu.dot_dimension_numbers<[1], [0], [0], [1], [0, 0, 1, 1], [], []>} : vector<8x64xf32>, vector<64x64xf32>, vector<8x64xf32> -> vector<8x64xf32>
    %c0_11 = arith.constant 0 : index
    %c0_12 = arith.constant 0 : index
    %12 = vector.load %arg7[%c0_11, %c0_12] : memref<1x64xf32, #tpu.memory_space<vmem>>, vector<1x64xf32>
    %13 = vector.broadcast %12 : vector<1x64xf32> to vector<8x64xf32>
    %14 = arith.addf %11, %13 : vector<8x64xf32>
    %cst_13 = arith.constant 0.000000e+00 : f32
    %15 = vector.broadcast %cst_13 : f32 to vector<8x64xf32>
    %16 = arith.maximumf %14, %15 : vector<8x64xf32>
    %c0_14 = arith.constant 0 : index
    %c0_15 = arith.constant 0 : index
    %17 = vector.load %arg5[%c0_14, %c0_15] : memref<64x2xf32, #tpu.memory_space<vmem>>, vector<64x2xf32>
    %cst_16 = arith.constant dense<0.000000e+00> : vector<8x2xf32>
    %18 = tpu.matmul %16, %17, %cst_16 {dimension_numbers = #tpu.dot_dimension_numbers<[1], [0], [0], [1], [0, 0, 1, 1], [], []>} : vector<8x64xf32>, vector<64x2xf32>, vector<8x2xf32> -> vector<8x2xf32>
    %c0_17 = arith.constant 0 : index
    %c0_18 = arith.constant 0 : index
    %19 = vector.load %arg8[%c0_17, %c0_18] : memref<1x2xf32, #tpu.memory_space<vmem>>, vector<1x2xf32>
    %20 = vector.broadcast %19 : vector<1x2xf32> to vector<8x2xf32>
    %21 = arith.addf %18, %20 : vector<8x2xf32>
    %c0_19 = arith.constant 0 : index
    %c0_20 = arith.constant 0 : index
    %22 = vector.load %arg9[%c0_19, %c0_20] : memref<8x2xf32, #tpu.memory_space<vmem>>, vector<8x2xf32>
    tpu.vector_store %arg9[%c0_19, %c0_20], %21 {strides = array<i32>} : memref<8x2xf32, #tpu.memory_space<vmem>>, vector<8x2xf32>,
    return
  }
  func.func @transform_0(%arg0: i32) -> (i32, i32) {
    %c0_i32 = arith.constant 0 : i32
    %c0_i32_0 = arith.constant 0 : i32
    return %arg0, %c0_i32 : i32, i32
  }
  func.func @transform_1(%arg0: i32) -> (i32, i32) {
    %c0_i32 = arith.constant 0 : i32
    %c0_i32_0 = arith.constant 0 : i32
    return %arg0, %c0_i32 : i32, i32
  }
  func.func @transform_2(%arg0: i32) -> (i32, i32) {
    %c0_i32 = arith.constant 0 : i32
    %c0_i32_0 = arith.constant 0 : i32
    %c0_i32_1 = arith.constant 0 : i32
    return %c0_i32, %c0_i32_0 : i32, i32
  }
  func.func @transform_3(%arg0: i32) -> (i32, i32) {
    %c0_i32 = arith.constant 0 : i32
    %c0_i32_0 = arith.constant 0 : i32
    %c0_i32_1 = arith.constant 0 : i32
    return %c0_i32, %c0_i32_0 : i32, i32
  }
  func.func @transform_4(%arg0: i32) -> (i32, i32) {
    %c0_i32 = arith.constant 0 : i32
    %c0_i32_0 = arith.constant 0 : i32
    %c0_i32_1 = arith.constant 0 : i32
    return %c0_i32, %c0_i32_0 : i32, i32
  }
  func.func @transform_5(%arg0: i32) -> (i32, i32) {
    %c0_i32 = arith.constant 0 : i32
    %c0_i32_0 = arith.constant 0 : i32
    %c0_i32_1 = arith.constant 0 : i32
    return %c0_i32, %c0_i32_0 : i32, i32
  }
  func.func @transform_6(%arg0: i32) -> (i32, i32) {
    %c0_i32 = arith.constant 0 : i32
    %c0_i32_0 = arith.constant 0 : i32
    %c0_i32_1 = arith.constant 0 : i32
    return %c0_i32, %c0_i32_0 : i32, i32
  }
  func.func @transform_7(%arg0: i32) -> (i32, i32) {
    %c0_i32 = arith.constant 0 : i32
    %c0_i32_0 = arith.constant 0 : i32
    %c0_i32_1 = arith.constant 0 : i32
    return %c0_i32, %c0_i32_0 : i32, i32
  }
  func.func @transform_8(%arg0: i32) -> (i32, i32) {
    %c0_i32 = arith.constant 0 : i32
    %c0_i32_0 = arith.constant 0 : i32
    return %arg0, %c0_i32 : i32, i32
  }
}

</mosaic_0001>

<bundles_post_ra>
// kernel: qnet_forward.1
= control target key start
LH: loop header
LB: loop body
LE: loop exit
PB: predicated region body
PF: predicated region fallthrough
CT: control target
= control target key end

     0   :  { %13 = vsyncpa [#allocation3], 0  ;;  %s771_s0 = inlined_call_operand.hbm [shape: f32[8,16], index: 0, kind: input, shape index: {}]   ;;  %s772_s1 = inlined_call_operand.hbm [shape: f32[8,8], index: 1, kind: input, shape index: {}]   ;;  %s773_s2 = inlined_call_operand.vmem [shape: f32[24,64], index: 2, kind: input, shape index: {}]   ;;  %s774_s3 = inlined_call_operand.vmem [shape: f32[64,64], index: 3, kind: input, shape index: {}]   ;;  %s775_s4 = inlined_call_operand.vmem [shape: f32[64,2], index: 4, kind: input, shape index: {}]   ;;  %s776_s5 = inlined_call_operand.hbm [shape: f32[1,64], index: 5, kind: input, shape index: {}]   ;;  %s777_s6 = inlined_call_operand.hbm [shape: f32[1,64], index: 6, kind: input, shape index: {}]   ;;  %s778_s7 = inlined_call_operand.hbm [shape: f32[1,2], index: 7, kind: input, shape index: {}]   ;;  %s779_s8 = inlined_call_operand.vmem [shape: f32[8,2], index: 8, kind: output, shape index: {}]  }
   0x1   :  { %14 = vsyncpa [#allocation5], 0 }
   0x2   :  { %15 = vsyncpa [#allocation8], 0  ;;  %s594_s27 = smov [#allocation4]   ;;  %s595_s29 = smov [#allocation7]  }
   0x3   :  { %s32_s28 = sshll.u32 %s594_s27, 4  ;;  %s58_s30 = sshll.u32 %s595_s29, 4  ;;  %s33_s28 = int_to_ptr.vmem [resolvable:$true] %s32_s28  ;;  %s59_s30 = int_to_ptr.vmem [resolvable:$true] %s58_s30 }
   0x4   :  { %s478_s11 = scalar_lea.hbm %s772_s1, 128 }
   0x5   :  { %p479_p0 = scmp.ne.s32.totalorder %s772_s1, %s478_s11  ;;  %p482_p1 = scmp.lt.u32.totalorder %s478_s11, %s772_s1 }
   0x7   :  { %p484_p2 = pnand %p482_p1, %p479_p0 }
   0x9   :  { %487 = shalt.err (!%p484_p2)
}
   0xa   :  { %s488_s16 = scalar_lea.vmem %s33_s28, 128  ;;  %p493_p4 = scmp.lt.s32.totalorder %s33_s28, %s33_s28 }
   0xb   :  { %p489_p3 = scmp.ne.s32.totalorder %s33_s28, %s488_s16  ;;  %p494_p5 = scmp.lt.s32.totalorder %s488_s16, %s488_s16 }
   0xd   :  { %p495_p6 = por %p494_p5, %p493_p4 }
   0xf   :  { %p496_p7 = pnand %p495_p6, %p489_p3 }
  0x11   :  { %499 = shalt.err (!%p496_p7)
}
  0x12   :  { %35 = dma.hbm_to_vmem [thread:$0]  %s772_s1, 128, %s33_s28, [#allocation5]  }
  0x13   :  { %s500_s21 = scalar_lea.hbm %s777_s6, 16 }
  0x14   :  { %p501_p8 = scmp.ne.s32.totalorder %s777_s6, %s500_s21  ;;  %p504_p9 = scmp.lt.u32.totalorder %s500_s21, %s777_s6 }
  0x16   :  { %p506_p10 = pnand %p504_p9, %p501_p8 }
  0x18   :  { %509 = shalt.err (!%p506_p10)
}
  0x19   :  { %s510_s26 = scalar_lea.vmem %s59_s30, 16  ;;  %s514_s27 = scalar_lea.vmem %s59_s30, 32 }
  0x1a   :  { %p511_p11 = scmp.ne.s32.totalorder %s59_s30, %s510_s26  ;;  %p515_p12 = scmp.lt.s32.totalorder %s59_s30, %s59_s30 }
  0x1b   :  { %p516_p13 = scmp.lt.s32.totalorder %s514_s27, %s510_s26 }
  0x1d   :  { %p517_p0 = por %p516_p13, %p515_p12 }
  0x1f   :  { %p518_p1 = pnand %p517_p0, %p511_p11 }
  0x21   :  { %521 = shalt.err (!%p518_p1)
}
  0x22   :  { %61 = dma.hbm_to_vmem [thread:$0]  %s777_s6, 16, %s59_s30, [#allocation8]  }
  0x23   :  { %s596_s29 = smov [#allocation2]   ;;  %s597_s10 = smov [#allocation6]  }
  0x24   :  { %s22_s9 = sshll.u32 %s596_s29, 4  ;;  %s48_s11 = sshll.u32 %s597_s10, 4  ;;  %s23_s9 = int_to_ptr.vmem [resolvable:$true] %s22_s9  ;;  %s49_s11 = int_to_ptr.vmem [resolvable:$true] %s48_s11 }
  0x25   :  { %s522_s14 = scalar_lea.hbm %s771_s0, 128 }
  0x26   :  { %p523_p2 = scmp.ne.s32.totalorder %s771_s0, %s522_s14  ;;  %p526_p3 = scmp.lt.u32.totalorder %s522_s14, %s771_s0 }
  0x28   :  { %p528_p4 = pnand %p526_p3, %p523_p2 }
  0x2a   :  { %531 = shalt.err (!%p528_p4)
}
  0x2b   :  { %s532_s6 = scalar_lea.vmem %s23_s9, 128  ;;  %p537_p6 = scmp.lt.s32.totalorder %s23_s9, %s23_s9 }
  0x2c   :  { %p533_p5 = scmp.ne.s32.totalorder %s23_s9, %s532_s6  ;;  %p538_p7 = scmp.lt.s32.totalorder %s532_s6, %s532_s6 }
  0x2e   :  { %p539_p8 = por %p538_p7, %p537_p6 }
  0x30   :  { %p540_p9 = pnand %p539_p8, %p533_p5 }
  0x32   :  { %543 = shalt.err (!%p540_p9)
}
  0x33   :  { %25 = dma.hbm_to_vmem [thread:$0]  %s771_s0, 128, %s23_s9, [#allocation3]  }
  0x34   :  { %s544_s22 = scalar_lea.hbm %s776_s5, 16 }
  0x35   :  { %p545_p10 = scmp.ne.s32.totalorder %s776_s5, %s544_s22  ;;  %p548_p11 = scmp.lt.u32.totalorder %s544_s22, %s776_s5 }
  0x37   :  { %p550_p12 = pnand %p548_p11, %p545_p10 }
  0x39   :  { %553 = shalt.err (!%p550_p12)
}
  0x3a   :  { %s554_s27 = scalar_lea.vmem %s49_s11, 16  ;;  %s558_s1 = scalar_lea.vmem %s49_s11, 32 }
  0x3b   :  { %p555_p13 = scmp.ne.s32.totalorder %s49_s11, %s554_s27  ;;  %p559_p0 = scmp.lt.s32.totalorder %s49_s11, %s49_s11 }
  0x3c   :  { %p560_p1 = scmp.lt.s32.totalorder %s558_s1, %s554_s27 }
  0x3e   :  { %p561_p2 = por %p560_p1, %p559_p0 }
  0x40   :  { %p562_p3 = pnand %p561_p2, %p555_p13 }
  0x42   :  { %565 = shalt.err (!%p562_p3)
}
  0x43   :  { %51 = dma.hbm_to_vmem [thread:$0]  %s776_s5, 16, %s49_s11, [#allocation5]  }
  0x44   :  { %s598_s29 = smov [#allocation9]   ;;  %s566_s13 = scalar_lea.hbm %s778_s7, 16 }
  0x45   :  { %s68_s9 = sshll.u32 %s598_s29, 4  ;;  %p567_p4 = scmp.ne.s32.totalorder %s778_s7, %s566_s13  ;;  %s69_s9 = int_to_ptr.vmem [resolvable:$true] %s68_s9 }
  0x46   :  { %p570_p5 = scmp.lt.u32.totalorder %s566_s13, %s778_s7 }
  0x48   :  { %p572_p6 = pnand %p570_p5, %p567_p4 }
  0x4a   :  { %575 = shalt.err (!%p572_p6)
}
  0x4b   :  { %s576_s18 = scalar_lea.vmem %s69_s9, 16  ;;  %s580_s5 = scalar_lea.vmem %s69_s9, 32 }
  0x4c   :  { %p577_p7 = scmp.ne.s32.totalorder %s69_s9, %s576_s18  ;;  %p581_p8 = scmp.lt.s32.totalorder %s69_s9, %s69_s9 }
  0x4d   :  { %p582_p9 = scmp.lt.s32.totalorder %s580_s5, %s576_s18 }
  0x4f   :  { %p583_p10 = por %p582_p9, %p581_p8 }
  0x51   :  { %p584_p11 = pnand %p583_p10, %p577_p7 }
  0x53   :  { %587 = shalt.err (!%p584_p11)
}
  0x54   :  { %71 = dma.hbm_to_vmem [thread:$0]  %s778_s7, 16, %s69_s9, [#allocation8]  }
  0x55   :  { %588 = dma.done.wait [#allocation3], 128  }
  0x56   :  { %589 = vsyncadd [#allocation3], 4294967168 }
  0x57   :  { %590 = dma.done.wait [#allocation5], 144  }
  0x58   :  { %591 = vsyncadd [#allocation5], 4294967152 }
  0x59   :  { %592 = dma.done.wait [#allocation8], 32  }
  0x5a   :  { %593 = vsyncadd [#allocation8], 4294967264  ;;  %v599_v0 = vmov 0.0|0.0   ;;  %vm600_vm0 = vmmov 0   ;;  %v601_v1 = vmov 0.0   ;;  %v88_v2 = vld [vmem:[#allocation4] sm:$0xff] }
  0x5b   :  { %442 = vmatprep.subr.bf16.mxu0 %v599_v0  ;;  %445 = vmatprep.subr.bf16.mxu1 %v599_v0  ;;  %v95_v3 = vld [vmem:[%s773_s2] sm:$0xff]  ;;  %v96_v4 = vld [vmem:[%s773_s2 + $0x8] sm:$0xff]  ;;  %s602_s21 = smov 16   ;;  %v182_v8 = vld [vmem:[%s774_s3 + $0x10] sm:$0xff]  ;;  %vm93_vm1 = vcmask 130048   ;;  %vm105_vm2 = vcmask 195584  }
  0x5c   :  { %401 = vmatprep.mubr.msk.f32.mxu0 %vm600_vm0, %v601_v1  ;;  %420 = vmatprep.mubr.msk.f32.mxu1 %vm600_vm0, %v601_v1  ;;  %v443_v5 = vpack.c.bf16 %v96_v4, %v95_v3  ;;  %v180_v6 = vld [vmem:[%s774_s3] sm:$0xff]  ;;  %v181_v7 = vld [vmem:[%s774_s3 + $0x8] sm:$0xff]  ;;  %v183_v9 = vld [vmem:[%s774_s3 + $0x18] sm:$0xff]  ;;  %vm195_vm3 = vcmask 523264   ;;  %vm358_vm4 = vcmask 15360  }
  0x5d   :  { %90 = vrot.lane.b32.xlu0 %v88_v2, %s602_s21  ;;  %v446_v10 = vpack.c.bf16 %v181_v7, %v180_v6  ;;  %v97_v11 = vld [vmem:[%s773_s2 + $0x10] sm:$0xff]  ;;  %v449_v12 = vpack.c.bf16 %v183_v9, %v182_v8  ;;  %v184_v13 = vld [vmem:[%s774_s3 + $0x20] sm:$0xff]  ;;  %v185_v14 = vld [vmem:[%s774_s3 + $0x28] sm:$0xff] }
  0x5e   :  { %444 = vmatpush3.bf16.msra.mxu0 %v443_v5  ;;  %v452_v15 = vpack.c.bf16 %v185_v14, %v184_v13  ;;  %v87_v16 = vld [vmem:[#allocation2] sm:$0xff]  ;;  %v186_v19 = vld [vmem:[%s774_s3 + $0x30] sm:$0xff]  ;;  %v187_v20 = vld [vmem:[%s774_s3 + $0x38] sm:$0xff] }
  0x5f   :  { %399 = vmatprep.subr.mxu0 %v601_v1  ;;  %447 = vmatpush3.bf16.msra.mxu1 %v446_v10  ;;  %v455_v21 = vpack.c.bf16 %v187_v20, %v186_v19  ;;  %v270_v22 = vld [vmem:[%s775_s4] sm:$0xff]  ;;  %v271_v23 = vld [vmem:[%s775_s4 + $0x8] sm:$0xff]  ;;  %v272_v24 = vld [vmem:[%s775_s4 + $0x10] sm:$0xff] }
  0x60   :  { %448 = vmatprep.subr.bf16.mxu1 %v599_v0  ;;  %v458_v25 = vpack.c.bf16 %v271_v23, %v270_v22  ;;  %v273_v26 = vld [vmem:[%s775_s4 + $0x18] sm:$0xff]  ;;  %v274_v28 = vld [vmem:[%s775_s4 + $0x20] sm:$0xff]  ;;  %v275_v29 = vld [vmem:[%s775_s4 + $0x28] sm:$0xff] }
  0x61   :  { %v461_v27 = vpack.c.bf16 %v273_v26, %v272_v24  ;;  %v464_v30 = vpack.c.bf16 %v275_v29, %v274_v28  ;;  %v367_v31 = vld [vmem:[#allocation6] ss:$0 sm:$0xff]  ;;  %v277_v37 = vld [vmem:[%s775_s4 + $0x38] sm:$0xff]  ;;  %v369_v39 = vld [vmem:[#allocation7] ss:$0 sm:$0xff] }
  0x62   :  { %400 = vmatpush3.msra.mxu0 %v97_v11  ;;  %v276_v36 = vld [vmem:[%s775_s4 + $0x30] sm:$0xff] }
  0x63   :  { %457 = vmatprep.subr.bf16.mxu0 %v599_v0  ;;  %450 = vmatpush3.bf16.msra.mxu1 %v449_v12  ;;  %v467_v38 = vpack.c.bf16 %v277_v37, %v276_v36  ;;  %v371_v44 = vld [vmem:[#allocation9] ss:$0 sm:$0xff] }
  0x64   :  { %451 = vmatprep.subr.bf16.mxu1 %v599_v0 }
  0x67   :  { %453 = vmatpush3.bf16.msra.mxu1 %v452_v15 }
  0x68   :  { %454 = vmatprep.subr.bf16.mxu1 %v599_v0 }
  0x6b   :  { %456 = vmatpush3.bf16.msra.mxu1 %v455_v21 }
  0xcf   :  { %v91_v17 = vpop.permute.xlu0 %90 }
  0xd0   :  { %v94_v18 = vsel %vm93_vm1, %v87_v16, %v91_v17 }
  0xd1   :  { %402 = vmatmul.mubr.msk.f32.vlgmr.msra.gmra.mrb[0].mxu0 %vm105_vm2, %v94_v18 }
  0xd2   :  { %439 = vmatprep.mubr.msk.f32.mxu0 %vm600_vm0, %v601_v1  ;;  %459 = vmatpush3.bf16.msra.mxu0 %v458_v25 }
  0xd3   :  { %460 = vmatprep.subr.bf16.mxu0 %v599_v0 }
  0xd6   :  { %462 = vmatpush3.bf16.msra.mxu0 %v461_v27 }
  0xd7   :  { %463 = vmatprep.subr.bf16.mxu0 %v599_v0 }
  0xda   :  { %465 = vmatpush3.bf16.msra.mxu0 %v464_v30 }
  0xdb   :  { %466 = vmatprep.subr.bf16.mxu0 %v599_v0 }
  0xde   :  { %468 = vmatpush3.bf16.msra.mxu0 %v467_v38 }
 0x1a4   :  { %v175_v32 = vpop.f32.mrb[0].mxu0 }
 0x1a5   :  { %v176_v33 = vadd.f32 %v367_v31, %v175_v32  ;;  %v403_v34 = vpop.f32.mrb[1].mxu0 }
 0x1a7   :  { %v179_v35 = vmax.f32 %v176_v33, 0.0 }
 0x1a9   :  { %421 = vmatmul.mubr.msk.f32.vlgmr.msra.gmra.mrb[0].mxu1 %vm195_vm3, %v179_v35 }
 0x27c   :  { %v265_v40 = vpop.f32.mrb[0].mxu1 }
 0x27d   :  { %v266_v41 = vadd.f32 %v369_v39, %v265_v40  ;;  %v422_v42 = vpop.f32.mrb[1].mxu1 }
 0x27f   :  { %v269_v43 = vmax.f32 %v266_v41, 0.0 }
 0x281   :  { %440 = vmatmul.mubr.msk.f32.vlgmr.msra.gmra.mrb[2].mxu0 %vm195_vm3, %v269_v43 }
 0x354   :  { %v354_v45 = vpop.f32.mrb[2].mxu0 }
 0x355   :  { %v355_v46 = vadd.f32 %v371_v44, %v354_v45  ;;  %v441_v47 = vpop.f32.mrb[3].mxu0 }
 0x357   :  { %359 = vst.msk [vmem:[%s779_s8] sm:$0xff] %vm358_vm4, %v355_v46 }
 0x358   :  { %364 = vsyncpa [#allocation3], 1 }
 0x359   :  { %365 = vsyncpa [#allocation5], 1 }
 0x35a   :  { %366 = vsyncpa [#allocation8], 1 }

</bundles_post_ra>
